<compile_context>
chip_gen: v7x
topology: tpu7x:2x2x1
jax: 0.10.0
libtpu: 0.0.40
codegen_flags: <defaults>
</compile_context>

<pallas_src>
import functools

import jax
import jax.numpy as jnp
from jax.experimental import pallas as pl
from jax.experimental.pallas import tpu as pltpu


_MAX_BATCH_BLOCK = 8   # cap on samples per fused block (bounds the static kernel unroll)


def _cdiv(a, b):
    return -(-a // b)


def _round_up(x, m):
    return _cdiv(x, m) * m


def _vmem_budget_bytes():
    """Generation-aware VMEM request: ~3/4 of physical per-core VMEM.

    v5e/v6e (128 MiB) -> 96 MiB, v7x (64 MiB) -> 48 MiB.  Falls back to a 64 MiB
    assumption (-> 48 MiB request), which is safe on every generation.
    """
    cap = 64 * 1024 * 1024
    try:
        info = pltpu.get_tpu_info()
        got = getattr(info, "vmem_capacity_bytes", None)
        if got:
            cap = int(got)
    except Exception:
        pass
    return int(min(cap * 3 // 4, cap - (8 << 20)))


# ---------------------------------------------------------------------------------
# Fused single-pass kernel
# ---------------------------------------------------------------------------------
def _se_fused_kernel(x_ref, w1_ref, b1_ref, w2_ref, b2_ref, o_ref, *, inv_hw):
    """Fused pool -> squeeze MLP -> gate -> scale on a VMEM-resident (Nb, C, HW) block."""
    x = x_ref[...]                                                    # (Nb, C, HW)
    xf = x if x.dtype == jnp.float32 else x.astype(jnp.float32)
    pooled = jnp.sum(xf, axis=-1, keepdims=True) * inv_hw             # (Nb, C, 1) f32
    for n in range(x_ref.shape[0]):                                   # static unroll, Nb small
        p = pooled[n]                                                                  # (C, 1)
        h = jnp.dot(w1_ref[...], p, preferred_element_type=jnp.float32) + b1_ref[...]  # (S, 1)
        h = h * jax.nn.sigmoid(h)                                                      # Swish
        s = jnp.dot(w2_ref[...], h, preferred_element_type=jnp.float32) + b2_ref[...]  # (C, 1)
        gate = jax.nn.sigmoid(s)
        o_ref[n] = x[n] * gate.astype(o_ref.dtype)


# ---------------------------------------------------------------------------------
# Two-phase fallback kernels (sample too large for VMEM residency)
# ---------------------------------------------------------------------------------
def _se_scale_kernel(x_ref, w1_ref, b1_ref, w2_ref, b2_ref, scale_ref, acc_ref,
                     *, hw, inv_hw, needs_mask):
    """Phase 1: accumulate the spatial sum over HW tiles; squeeze MLP on the last tile."""
    t = pl.program_id(1)

    @pl.when(t == 0)
    def _():
        acc_ref[...] = jnp.zeros_like(acc_ref)

    x = x_ref[0]                                                      # (C, T)
    if needs_mask:                                                    # static: HW % T != 0
        tile = x.shape[-1]
        lane = jax.lax.broadcasted_iota(jnp.int32, (1, tile), 1)
        x = jnp.where(t * tile + lane < hw, x, jnp.zeros_like(x))     # zero OOB tail lanes
    xf = x if x.dtype == jnp.float32 else x.astype(jnp.float32)
    acc_ref[...] += jnp.sum(xf, axis=-1, keepdims=True)               # (C, 1) f32

    @pl.when(t == pl.num_programs(1) - 1)
    def _():
        pooled = acc_ref[...] * inv_hw                                                  # (C, 1)
        h = jnp.dot(w1_ref[...], pooled, preferred_element_type=jnp.float32) + b1_ref[...]
        h = h * jax.nn.sigmoid(h)                                                       # Swish
        s = jnp.dot(w2_ref[...], h, preferred_element_type=jnp.float32) + b2_ref[...]
        scale_ref[0] = jax.nn.sigmoid(s)                                                # (C, 1)


def _se_apply_kernel(scale_ref, x_ref, o_ref):
    """Phase 2: out = x * gate (broadcast over the spatial/lane axis), in x's dtype."""
    x = x_ref[0]                                   # (C, T)
    o_ref[0] = x * scale_ref[0].astype(x.dtype)


# ---------------------------------------------------------------------------------
# Wrapper
# ---------------------------------------------------------------------------------
def squeeze_and_excite(x, w1, b1, w2, b2, *, force_two_phase=False, max_lane_tile=None):
    """x: (N, C, H, W); w1: (S, C); b1: (S, 1); w2: (C, S); b2: (C, 1) -> (N, C, H, W).

    `force_two_phase` / `max_lane_tile` only exist to exercise the large-sample fallback
    path at small test shapes.
    """
    N, C, H, W = x.shape
    S = w1.shape[0]
    HW = H * W
    itemsize = jnp.dtype(x.dtype).itemsize
    x2 = x.reshape(N, C, HW)

    vmem_limit = _vmem_budget_bytes()
    blk_budget = max(1 << 20, vmem_limit - (2 << 20))   # headroom for weights / misc scratch

    # Per-sample VMEM cost of the fused path: in + out blocks (double-buffered) plus an
    # f32 upcast temporary for the pooled reduce (sub-f32 inputs only) and one block of
    # slack for the elementwise output expression.
    fused_bytes_per_sample = C * HW * (5 * itemsize + (0 if itemsize >= 4 else 4))

    if not force_two_phase and fused_bytes_per_sample <= blk_budget:
        # ------------------ fused single-pass path: 1 HBM read + 1 HBM write of x ----
        nb_budget = max(1, blk_budget // fused_bytes_per_sample)
        # Keep >= 2 grid steps when N >= 2 (v7x megacore sharding + DMA/compute overlap)
        # and bound the static per-block unroll.
        Nb = int(max(1, min(nb_budget, _MAX_BATCH_BLOCK, _cdiv(N, 2), N)))
        n_blocks = _cdiv(N, Nb)

        out2 = pl.pallas_call(
            functools.partial(_se_fused_kernel, inv_hw=1.0 / HW),
            out_shape=jax.ShapeDtypeStruct((N, C, HW), x.dtype),
            grid_spec=pltpu.PrefetchScalarGridSpec(
                num_scalar_prefetch=0,
                grid=(n_blocks,),
                in_specs=[
                    pl.BlockSpec((Nb, C, HW), lambda n: (n, 0, 0)),   # x batch-block slab
                    pl.BlockSpec((S, C), lambda n: (0, 0)),           # se_reduce weight
                    pl.BlockSpec((S, 1), lambda n: (0, 0)),           # se_reduce bias
                    pl.BlockSpec((C, S), lambda n: (0, 0)),           # se_expand weight
                    pl.BlockSpec((C, 1), lambda n: (0, 0)),           # se_expand bias
                ],
                out_specs=pl.BlockSpec((Nb, C, HW), lambda n: (n, 0, 0)),
            ),
            compiler_params=pltpu.CompilerParams(
                dimension_semantics=("parallel",),
                vmem_limit_bytes=vmem_limit,
            ),
            cost_estimate=pl.CostEstimate(
                flops=3 * N * C * HW + 4 * N * S * C,
                transcendentals=N * (S + C),
                bytes_accessed=2 * N * C * HW * itemsize,
            ),
        )(x2, w1, b1, w2, b2)
        return out2.reshape(N, C, H, W)

    # ------------- two-phase fallback: sample too large for VMEM residency -----------
    # Lane tile sized from a byte budget (phase-2 in+out double-buffered + masking /
    # upcast temporaries); cdiv grid with a masked partial last tile -- no padding of x.
    lane_bytes = C * (4 * itemsize + 8)
    t_budget = max(128, blk_budget // lane_bytes)
    if max_lane_tile is not None:
        t_budget = min(t_budget, max_lane_tile)
    T = max(128, min(t_budget, _round_up(HW, 128)) // 128 * 128)
    n_hw = _cdiv(HW, T)
    needs_mask = (HW % T) != 0

    # NOTE: with ("parallel", "arbitrary") semantics the pooling pass of a single sample
    # runs on one TensorCore on v7x; acceptable for this rarely-taken fallback path.
    scale = pl.pallas_call(
        functools.partial(_se_scale_kernel, hw=HW, inv_hw=1.0 / HW, needs_mask=needs_mask),
        out_shape=jax.ShapeDtypeStruct((N, C, 1), jnp.float32),
        grid_spec=pltpu.PrefetchScalarGridSpec(
            num_scalar_prefetch=0,
            grid=(N, n_hw),
            in_specs=[
                pl.BlockSpec((1, C, T), lambda n, t: (n, 0, t)),      # x tile
                pl.BlockSpec((S, C), lambda n, t: (0, 0)),            # se_reduce weight
                pl.BlockSpec((S, 1), lambda n, t: (0, 0)),            # se_reduce bias
                pl.BlockSpec((C, S), lambda n, t: (0, 0)),            # se_expand weight
                pl.BlockSpec((C, 1), lambda n, t: (0, 0)),            # se_expand bias
            ],
            out_specs=pl.BlockSpec((1, C, 1), lambda n, t: (n, 0, 0)),
            scratch_shapes=[pltpu.VMEM((C, 1), jnp.float32)],         # pooled-sum accumulator
        ),
        compiler_params=pltpu.CompilerParams(
            dimension_semantics=("parallel", "arbitrary"),
            vmem_limit_bytes=vmem_limit,
        ),
        cost_estimate=pl.CostEstimate(
            flops=2 * N * C * HW + 4 * N * S * C,
            transcendentals=N * (S + C),
            bytes_accessed=N * C * HW * itemsize + N * C * 4,
        ),
    )(x2, w1, b1, w2, b2)

    out2 = pl.pallas_call(
        _se_apply_kernel,
        out_shape=jax.ShapeDtypeStruct((N, C, HW), x.dtype),
        grid_spec=pltpu.PrefetchScalarGridSpec(
            num_scalar_prefetch=0,
            grid=(N, n_hw),
            in_specs=[
                pl.BlockSpec((1, C, 1), lambda n, t: (n, 0, 0)),      # per-channel gate
                pl.BlockSpec((1, C, T), lambda n, t: (n, 0, t)),      # x tile
            ],
            out_specs=pl.BlockSpec((1, C, T), lambda n, t: (n, 0, t)),
        ),
        compiler_params=pltpu.CompilerParams(
            dimension_semantics=("parallel", "parallel"),
            vmem_limit_bytes=vmem_limit,
        ),
        cost_estimate=pl.CostEstimate(
            flops=N * C * HW,
            transcendentals=0,
            bytes_accessed=2 * N * C * HW * itemsize + N * C * 4,
        ),
    )(scale, x2)

    return out2.reshape(N, C, H, W)


def _reference(x, w1, b1, w2, b2):
    pooled = jnp.mean(x, axis=(2, 3), keepdims=True)                      # (N, C, 1, 1)
    h = jnp.einsum("sc,ncij->nsij", w1, pooled) + b1[None, :, :, None]    # (N, S, 1, 1)
    h = h * jax.nn.sigmoid(h)
    s = jnp.einsum("cs,nsij->ncij", w2, h) + b2[None, :, :, None]         # (N, C, 1, 1)
    return x * jax.nn.sigmoid(s)


if __name__ == "__main__":
    # Module config: channels=4, squeeze_channels=4, se_ratio=0.5 -> S = 2
    N, C, H, W = 2, 4, 16, 16
    S = int(4 * 0.5)

    key = jax.random.PRNGKey(0)
    kx, k1, kb1, k2, kb2 = jax.random.split(key, 5)

    x = jax.random.normal(kx, (N, C, H, W), dtype=jnp.float32)
    # 1x1 conv weights (kernel spatial dims squeezed away): se_reduce (S, C), se_expand (C, S)
    w1 = jax.random.normal(k1, (S, C), dtype=jnp.float32) * 0.1
    b1 = jax.random.normal(kb1, (S, 1), dtype=jnp.float32) * 0.1
    w2 = jax.random.normal(k2, (C, S), dtype=jnp.float32) * 0.1
    b2 = jax.random.normal(kb2, (C, 1), dtype=jnp.float32) * 0.1

    ref = _reference(x, w1, b1, w2, b2)

    # 1) fused single-pass path (default), 16x16 spatial
    out = jax.block_until_ready(squeeze_and_excite(x, w1, b1, w2, b2))
    assert out.shape == (N, C, H, W)
    assert jnp.allclose(out, ref, atol=1e-5, rtol=1e-5), "mismatch vs reference (fused)"

    # 2) fused path on a non-128-multiple spatial extent (7x7 -> HW=49, full-dim block)
    x_odd = jax.random.normal(kx, (N, C, 7, 7), dtype=jnp.float32)
    ref_odd = _reference(x_odd, w1, b1, w2, b2)
    out_odd = jax.block_until_ready(squeeze_and_excite(x_odd, w1, b1, w2, b2))
    assert out_odd.shape == (N, C, 7, 7)
    assert jnp.allclose(out_odd, ref_odd, atol=1e-5, rtol=1e-5), "mismatch (fused, HW=49)"

    # 3) two-phase fallback path: multi-tile accumulation (HW=256, T=128, no mask)
    out_tp = jax.block_until_ready(
        squeeze_and_excite(x, w1, b1, w2, b2, force_two_phase=True, max_lane_tile=128))
    assert jnp.allclose(out_tp, ref, atol=1e-5, rtol=1e-5), "mismatch (two-phase)"

    # 4) two-phase fallback with a masked partial last tile (HW=49 < T=128)
    out_tp_odd = jax.block_until_ready(
        squeeze_and_excite(x_odd, w1, b1, w2, b2, force_two_phase=True, max_lane_tile=128))
    assert jnp.allclose(out_tp_odd, ref_odd, atol=1e-5, rtol=1e-5), "mismatch (two-phase, masked tail)"

    print("KERNEL_OK")
</pallas_src>

<mosaic_0001>
module attributes {stable_mosaic.version = 11 : i64} {
  func.func @_se_fused_kernel(%arg0: i32, %arg1: memref<1x4x256xf32, #tpu.memory_space<vmem>>, %arg2: memref<2x4xf32, #tpu.memory_space<vmem>>, %arg3: memref<2x1xf32, #tpu.memory_space<vmem>>, %arg4: memref<4x2xf32, #tpu.memory_space<vmem>>, %arg5: memref<4x1xf32, #tpu.memory_space<vmem>>, %arg6: memref<1x4x256xf32, #tpu.memory_space<vmem>>) attributes {dimension_semantics = [#tpu.dimension_semantics<parallel>], iteration_bounds = array<i64: 2>, scalar_prefetch = 0 : i64, scratch_operands = 0 : i64, tpu.core_type = #tpu.core_type<tc>, window_params = [{transform_indices = @transform_0, window_bounds = array<i64: 1, 4, 256>}, {pipeline_mode = #tpu.pipeline_mode<synchronous>, transform_indices = @transform_1, window_bounds = array<i64: 2, 4>}, {pipeline_mode = #tpu.pipeline_mode<synchronous>, transform_indices = @transform_2, window_bounds = array<i64: 2, 1>}, {pipeline_mode = #tpu.pipeline_mode<synchronous>, transform_indices = @transform_3, window_bounds = array<i64: 4, 2>}, {pipeline_mode = #tpu.pipeline_mode<synchronous>, transform_indices = @transform_4, window_bounds = array<i64: 4, 1>}, {transform_indices = @transform_5, window_bounds = array<i64: 1, 4, 256>}]} {
    %c0 = arith.constant 0 : index
    %c0_0 = arith.constant 0 : index
    %c0_1 = arith.constant 0 : index
    %0 = vector.load %arg1[%c0, %c0_0, %c0_1] : memref<1x4x256xf32, #tpu.memory_space<vmem>>, vector<1x4x256xf32>
    %cst = arith.constant dense<0.000000e+00> : vector<1x4xf32>
    %1 = vector.multi_reduction <add>, %0, %cst [2] : vector<1x4x256xf32> to vector<1x4xf32>
    %2 = vector.shape_cast %1 : vector<1x4xf32> to vector<1x4x1xf32>
    %cst_2 = arith.constant 3.906250e-03 : f32
    %3 = vector.broadcast %cst_2 : f32 to vector<1x4x1xf32>
    %4 = arith.mulf %2, %3 : vector<1x4x1xf32>
    %5 = vector.shape_cast %4 : vector<1x4x1xf32> to vector<4x1xf32>
    %c0_3 = arith.constant 0 : index
    %c0_4 = arith.constant 0 : index
    %6 = vector.load %arg2[%c0_3, %c0_4] : memref<2x4xf32, #tpu.memory_space<vmem>>, vector<2x4xf32>
    %cst_5 = arith.constant dense<0.000000e+00> : vector<2x1xf32>
    %7 = tpu.matmul %6, %5, %cst_5 {dimension_numbers = #tpu.dot_dimension_numbers<[1], [0], [0], [1], [0, 0, 1, 1], [], []>} : vector<2x4xf32>, vector<4x1xf32>, vector<2x1xf32> -> vector<2x1xf32>
    %c0_6 = arith.constant 0 : index
    %c0_7 = arith.constant 0 : index
    %8 = vector.load %arg3[%c0_6, %c0_7] : memref<2x1xf32, #tpu.memory_space<vmem>>, vector<2x1xf32>
    %9 = arith.addf %7, %8 : vector<2x1xf32>
    %10 = arith.negf %9 : vector<2x1xf32>
    %11 = math.exp %10 : vector<2x1xf32>
    %cst_8 = arith.constant 1.000000e+00 : f32
    %12 = vector.broadcast %cst_8 : f32 to vector<2x1xf32>
    %13 = arith.addf %12, %11 : vector<2x1xf32>
    %14 = arith.divf %12, %13 : vector<2x1xf32>
    %15 = arith.mulf %9, %14 : vector<2x1xf32>
    %c0_9 = arith.constant 0 : index
    %c0_10 = arith.constant 0 : index
    %16 = vector.load %arg4[%c0_9, %c0_10] : memref<4x2xf32, #tpu.memory_space<vmem>>, vector<4x2xf32>
    %cst_11 = arith.constant dense<0.000000e+00> : vector<4x1xf32>
    %17 = tpu.matmul %16, %15, %cst_11 {dimension_numbers = #tpu.dot_dimension_numbers<[1], [0], [0], [1], [0, 0, 1, 1], [], []>} : vector<4x2xf32>, vector<2x1xf32>, vector<4x1xf32> -> vector<4x1xf32>
    %c0_12 = arith.constant 0 : index
    %c0_13 = arith.constant 0 : index
    %18 = vector.load %arg5[%c0_12, %c0_13] : memref<4x1xf32, #tpu.memory_space<vmem>>, vector<4x1xf32>
    %19 = arith.addf %17, %18 : vector<4x1xf32>
    %20 = arith.negf %19 : vector<4x1xf32>
    %21 = math.exp %20 : vector<4x1xf32>
    %cst_14 = arith.constant 1.000000e+00 : f32
    %22 = vector.broadcast %cst_14 : f32 to vector<4x1xf32>
    %23 = arith.addf %22, %21 : vector<4x1xf32>
    %24 = arith.divf %22, %23 : vector<4x1xf32>
    %25 = vector.shape_cast %0 : vector<1x4x256xf32> to vector<4x256xf32>
    %26 = vector.broadcast %24 : vector<4x1xf32> to vector<4x256xf32>
    %27 = arith.mulf %25, %26 : vector<4x256xf32>
    %c0_15 = arith.constant 0 : index
    %c0_16 = arith.constant 0 : index
    %c0_17 = arith.constant 0 : index
    %28 = vector.load %arg6[%c0_15, %c0_16, %c0_17] : memref<1x4x256xf32, #tpu.memory_space<vmem>>, vector<1x4x256xf32>
    %29 = vector.shape_cast %28 : vector<1x4x256xf32> to vector<4x256xf32>
    %30 = vector.shape_cast %27 : vector<4x256xf32> to vector<1x4x256xf32>
    tpu.vector_store %arg6[%c0_15, %c0_16, %c0_17], %30 {strides = array<i32>} : memref<1x4x256xf32, #tpu.memory_space<vmem>>, vector<1x4x256xf32>,
    return
  }
  func.func @transform_0(%arg0: i32) -> (i32, i32, i32) {
    %c0_i32 = arith.constant 0 : i32
    %c0_i32_0 = arith.constant 0 : i32
    %c0_i32_1 = arith.constant 0 : i32
    return %arg0, %c0_i32, %c0_i32_0 : i32, i32, i32
  }
  func.func @transform_1(%arg0: i32) -> (i32, i32) {
    %c0_i32 = arith.constant 0 : i32
    %c0_i32_0 = arith.constant 0 : i32
    %c0_i32_1 = arith.constant 0 : i32
    return %c0_i32, %c0_i32_0 : i32, i32
  }
  func.func @transform_2(%arg0: i32) -> (i32, i32) {
    %c0_i32 = arith.constant 0 : i32
    %c0_i32_0 = arith.constant 0 : i32
    %c0_i32_1 = arith.constant 0 : i32
    return %c0_i32, %c0_i32_0 : i32, i32
  }
  func.func @transform_3(%arg0: i32) -> (i32, i32) {
    %c0_i32 = arith.constant 0 : i32
    %c0_i32_0 = arith.constant 0 : i32
    %c0_i32_1 = arith.constant 0 : i32
    return %c0_i32, %c0_i32_0 : i32, i32
  }
  func.func @transform_4(%arg0: i32) -> (i32, i32) {
    %c0_i32 = arith.constant 0 : i32
    %c0_i32_0 = arith.constant 0 : i32
    %c0_i32_1 = arith.constant 0 : i32
    return %c0_i32, %c0_i32_0 : i32, i32
  }
  func.func @transform_5(%arg0: i32) -> (i32, i32, i32) {
    %c0_i32 = arith.constant 0 : i32
    %c0_i32_0 = arith.constant 0 : i32
    %c0_i32_1 = arith.constant 0 : i32
    return %arg0, %c0_i32, %c0_i32_0 : i32, i32, i32
  }
}

</mosaic_0001>

<bundles_post_ra>
// kernel: tpu_custom_call.1
= control target key start
LH: loop header
LB: loop body
LE: loop exit
PB: predicated region body
PF: predicated region fallthrough
CT: control target
= control target key end

     0   :  { %10 = vsyncpa [#allocation3], 0  ;;  %s933_s0 = inlined_call_operand.hbm [shape: f32[2,4,256], index: 0, kind: input, shape index: {}]   ;;  %s934_s1 = inlined_call_operand.vmem [shape: f32[2,4], index: 1, kind: input, shape index: {}]   ;;  %s935_s2 = inlined_call_operand.vmem [shape: f32[2,1], index: 2, kind: input, shape index: {}]   ;;  %s936_s3 = inlined_call_operand.vmem [shape: f32[4,2], index: 3, kind: input, shape index: {}]   ;;  %s937_s4 = inlined_call_operand.vmem [shape: f32[4,1], index: 4, kind: input, shape index: {}]   ;;  %s938_s5 = inlined_call_operand.hbm [shape: f32[2,4,256], index: 5, kind: output, shape index: {}]  }
   0x1   :  { %12 = vsyncpa [#allocation3 + $0x1], 0 }
   0x2   :  { %13 = vsyncpa [#allocation4], 0 }
   0x3   :  { %15 = vsyncpa [#allocation4 + $0x1], 0  ;;  %s753_s18 = smov 0   ;;  %s755_s19 = smov 0  }
   0x4   :  { %s757_s20 = smov 0   ;;  %s759_s21 = smov 0  }
   0x5 LB: > { %s774_s22 = sadd.s32 4294967295, %s715_s21   ;;  %s523_s23 = sadd.s32 4294967294, %s715_s21   ;;  %s715_s21 = sphi %s759_s21, %s953_s21   ;;  %s711_s20 = sphi %s757_s20, %s952_s20   ;;  %s707_s19 = sphi %s755_s19, %s951_s19   ;;  %s703_s18 = sphi %s753_s18, %s950_s18  }
   0x6   : > { %s778_s24 = sadd.s32 1, %s715_s21   ;;  %s28_s25 = sadd.s32 1, %s711_s20 }
   0x7   : > { %s25_s26 = ssub.s32 %s715_s21, %s778_s24  ;;  %p35_p0 = scmp.ne.s32.totalorder %s711_s20, %s707_s19 }
   0x8   : > { %p26_p1 = scmp.eq.s32.totalorder %s25_s26, 0  ;;  %p36_p2 = scmp.eq.s32.totalorder %s715_s21, 0 }
   0x9   : > { %p41_p3 = scmp.ne.s32.totalorder %s707_s19, %s703_s18  ;;  %p42_p4 = scmp.eq.s32.totalorder %s774_s22, 0 }
   0xa   : > { %s790_s27 = scalar_select %p26_p1, %s711_s20, %s28_s25  }
   0xb   : > { %p792_p5 = por %p36_p2, %p35_p0  ;;  %p796_p6 = por %p42_p4, %p41_p3 }
   0xc   : > { %p149_p7 = scmp.eq.s32.totalorder %s774_s22, 1  ;;  %p155_p8 = scmp.eq.s32.totalorder %s523_s23, 1 }
   0xd   : > { %p571_p10 = scmp.lt.s32.totalorder %s715_s21, 2  ;;  %s187_s7 = sand.u32 1, %s711_s20  }
   0xe   : > { %p803_p11 = por %p149_p7, %p35_p0  ;;  %p807_p12 = por %p155_p8, %p41_p3 }
   0xf   : > { %s543_s8 = sshll.u32 %s715_s21, 7  ;;  %s526_s9 = sshll.u32 %s187_s7, 3 }
  0x10   : > { %s942_s30 = scalar_select %p803_p11, 1, 0 }
  0x11   : > { %s943_s6 = scalar_select %p807_p12, 1, 0 }
  0x12   : > { %s816_s12 = scalar_lea.hbm %s933_s0, %s543_s8  ;;  %s191_s13 = scalar_lea.vmem [#allocation2], %s526_s9 }
  0x13   : > { %s199_s14 = sshll.u32 %s191_s13, 4  ;;  %p820_p13 = pnand %p571_p10, %p792_p5  ;;  %s824_s14 = int_to_ptr.vmem [resolvable:$true] %s199_s14 }
  0x14   : > { %s188_s16 = scalar_lea.sflag [#allocation3], %s187_s7  ;;  %s619_s17 = scalar_lea.hbm %s816_s12, 128 }
  0x15   : > { %p620_p2 = scmp.ne.s32.totalorder %s816_s12, %s619_s17  ;;  %p621_p3 = pneg %p820_p13 }
  0x16   : > { %s624_s26 = scalar_lea.hbm %s933_s0, 256  ;;  %p625_p5 = scmp.lt.u32.totalorder %s816_s12, %s933_s0 }
  0x17   : > { %p622_p4 = pnand %p621_p3, %p620_p2  ;;  %p626_p8 = scmp.lt.u32.totalorder %s624_s26, %s619_s17 }
  0x18   : > { %p628_p9 = scmp.lt.u32.totalorder %s619_s17, %s816_s12 }
  0x19   : > { %p623_p7 = pneg %p622_p4  ;;  %p627_p10 = por %p626_p8, %p625_p5 }
  0x1b   : > { %p629_p0 = por %p628_p9, %p627_p10 }
  0x1d   : > { %p630_p1 = pnand %p629_p0, %p623_p7 }
  0x1f   : > { %633 = shalt.err (!%p630_p1)
}
  0x20   : > { %s634_s7 = scalar_lea.vmem %s824_s14, 128  ;;  %s717_s9 = smov [#allocation2]  }
  0x21   : > { %p635_p2 = scmp.ne.s32.totalorder %s824_s14, %s634_s7  ;;  %s639_s10 = sshll.u32 %s717_s9, 4  ;;  %s640_s10 = int_to_ptr.vmem [resolvable:$false] %s639_s10 }
  0x22   : > { %s641_s11 = scalar_lea.vmem %s640_s10, 256  ;;  %p642_p11 = scmp.lt.s32.totalorder %s824_s14, %s640_s10 }
  0x23   : > { %p637_p4 = pnand %p635_p2, %p621_p3  ;;  %p643_p5 = scmp.lt.s32.totalorder %s641_s11, %s634_s7 }
  0x25   : > { %p638_p12 = pneg %p637_p4  ;;  %p644_p8 = por %p643_p5, %p642_p11 }
  0x27   : > { %p645_p9 = pnand %p644_p8, %p638_p12 }
  0x29   : > { %648 = shalt.err (!%p645_p9)
}
  0x2a   : > { %566 = dma.hbm_to_vmem [thread:$0]  (!%p820_p13), %s816_s12, 128, %s824_s14, %s188_s16  }
  0x2b   : > { %p945_p0 = scmp.lt.s32.totalorder %s715_s21, 3  ;;  %p946_p1 = scmp.ge.s32.totalorder %s715_s21, 1 }
  0x2d   : > { %p205_p3 = pnand %p946_p1, %p945_p0 }
  0x2e   : > { %s858_s13 = sand.u32 (!%p205_p3), 1, %s707_s19  }
  0x2f   : > { %208 = sbr.rel (%p205_p3) target bundleno = 835 (0x343), region = 40  ;;  %s530_s17 = sshll.u32 (!%p205_p3), %s858_s13, 3 }
  0x30   : > { %s211_s23 = scalar_lea.sflag (!%p205_p3), [#allocation3], %s858_s13  ;;  %s214_s15 = scalar_lea.vmem (!%p205_p3), [#allocation2], %s530_s17 }
  0x36   : > { %694 = dma.done.wait (%p796_p6), %s211_s23, 128  }
  0x37   : > { %696 = vsyncadd (%p796_p6), %s211_s23, 4294967168  ;;  %vm245_vm0 = vcmask 1043456   ;;  %v241_v0 = vld [vmem:[%s214_s15] sm:$0xff]  ;;  %v718_v5 = vmov 0.0   ;;  %vm719_vm1 = vmmov 0   ;;  %vm254_vm2 = vcmask 31744  }
  0x38   : > { %v243_v1 = vcombine.high %v241_v0, %v241_v0  ;;  %v246_v2 = vsel %vm245_vm0, %v241_v0, 0.0  ;;  %549 = vmatprep.subr.mxu0 %v718_v5  ;;  %554 = vmatprep.subr.mxu1 %v718_v5  ;;  %v252_v8 = vld [vmem:[%s934_s1] sm:$0x3]  ;;  %vm344_vm3 = vcmask 1041408   ;;  %vm340_vm4 = vcmask 15360   ;;  %s544_s7 = sshll.u32 %s774_s22, 7 }
  0x39   : > { %551 = vmatprep.mubr.msk.f32.mxu0 %vm719_vm1, %v718_v5  ;;  %556 = vmatprep.mubr.msk.f32.mxu1 %vm719_vm1, %v718_v5  ;;  %v253_v9 = vld [vmem:[%s935_s2] sm:$0x3]  ;;  %v720_v19 = vmov 0   ;;  %v721_v28 = vmov 839922192   ;;  %v431_v30 = vlaneseq  ;;  %s240_s9 = scalar_lea.vmem [#allocation5], %s530_s17  ;;  %s889_s15 = scalar_lea.hbm %s938_s5, %s544_s7 }
  0x3a   : > { %v247_v3 = vsel %vm245_vm0, %v243_v1, 0.0  ;;  %v338_v18 = vld [vmem:[%s936_s3] sm:$0xf]  ;;  %609 = vset.pattern.permute.xlu0 %v720_v19  ;;  %v429_v29 = vunpack.c.l.s4 %v721_v28  ;;  %s453_s10 = sshll.u32 %s240_s9, 4  ;;  %s439_s12 = scalar_lea.sflag [#allocation4], %s858_s13  ;;  %s891_s10 = int_to_ptr.vmem [resolvable:$true] %s453_s10 }
  0x3b   : > { %v248_v4 = vadd.f32 %v247_v3, %v246_v2  ;;  %v339_v20 = vld [vmem:[%s937_s4] sm:$0xf]  ;;  %v432_v32 = vshrl.u32 %v431_v30, 7  ;;  %s649_s29 = scalar_lea.vmem %s891_s10, 128  ;;  %p947_p11 = scmp.ne.s32.totalorder %s942_s30, 0 }
  0x3c   : > { %v430_v31 = vunpack.c.0.s8 %v429_v29  ;;  %p650_p6 = scmp.ne.s32.totalorder %s891_s10, %s649_s29  ;;  %s722_s22 = smov [#allocation5]  }
  0x3d   : > { %249 = vadd.xlane.f32.xlu0 %v248_v4  ;;  %s653_s17 = sshll.u32 %s722_s22, 4  ;;  %s654_s17 = int_to_ptr.vmem [resolvable:$false] %s653_s17 }
  0x3e   : > { %v433_v33 = vsub.s32 %v430_v31, %v432_v32  ;;  %p651_p12 = pnand %p650_p6, %p947_p11  ;;  %s655_s14 = scalar_lea.vmem %s654_s17, 256 }
  0x3f   : > { %p656_p7 = scmp.lt.s32.totalorder %s891_s10, %s654_s17  ;;  %p657_p10 = scmp.lt.s32.totalorder %s655_s14, %s649_s29 }
  0x40   : > { %p652_p13 = pneg %p651_p12 }
  0x41   : > { %p658_p2 = por %p657_p10, %p656_p7 }
  0x43   : > { %p659_p4 = pnand %p658_p2, %p652_p13 }
  0xca   : > { %v250_v6 = vpop.xlane.xlu0 %249 }
  0xcb   : > { %v251_v7 = vmul.f32 0.00390625, %v250_v6 }
  0xcd   : > { %550 = vmatpush3.msk.msra.mxu0 %vm245_vm0, %v251_v7 }
  0xce   : > { %552 = vmatmul.mubr.msk.f32.vlgmr.msra.gmra.mrb[0].mxu0 %vm254_vm2, %v252_v8 }
 0x1a1   : > { %v327_v10 = vpop.f32.mrb[0].mxu0 }
 0x1a2   : > { %v328_v11 = vadd.f32 %v327_v10, %v253_v9  ;;  %v553_v12 = vpop.f32.mrb[1].mxu0 }
 0x1a4   : > { %v534_v13 = vmul.f32 -1.442695, %v328_v11 }
 0x1a6   : > { %611 = vpow2.f32 %v534_v13 }
 0x1b0   : > { %v612_v14 = vpop.eup %611 }
 0x1b1   : > { %v334_v15 = vadd.f32 1.0, %v612_v14 }
 0x1b3   : > { %613 = vrcp.f32 %v334_v15 }
 0x1bd   : > { %v614_v16 = vpop.eup %613 }
 0x1be   : > { %v337_v17 = vmul.f32 %v614_v16, %v328_v11 }
 0x1c0   : > { %555 = vmatpush3.msk.msra.mxu1 %vm344_vm3, %v337_v17 }
 0x1c1   : > { %557 = vmatmul.mubr.msk.f32.vlgmr.msra.gmra.mrb[0].mxu1 %vm340_vm4, %v338_v18 }
 0x294   : > { %v414_v21 = vpop.f32.mrb[0].mxu1 }
 0x295   : > { %v415_v22 = vadd.f32 %v414_v21, %v339_v20  ;;  %v558_v23 = vpop.f32.mrb[1].mxu1 }
 0x297   : > { %v537_v24 = vmul.f32 -1.442695, %v415_v22 }
 0x299   : > { %615 = vpow2.f32 %v537_v24 }
 0x2a3   : > { %v616_v25 = vpop.eup %615 }
 0x2a4   : > { %v421_v26 = vadd.f32 1.0, %v616_v25 }
 0x2a6   : > { %617 = vrcp.f32 %v421_v26 }
 0x2b0   : > { %v618_v27 = vpop.eup %617 }
 0x2b1   : > { %426 = vperm.xlu0 %609, %v618_v27  }
 0x330   : > { %v427_v34 = vpop.permute.xlu0 %426 }
 0x331   : > { %v434_v35 = vrot.slane %v427_v34, %v433_v33 }
 0x333   : > { %v436_v36 = vmul.f32 %v434_v35, %v241_v0 }
 0x335   : > { %437 = vst [vmem:[%s240_s9] sm:$0xff] %v436_v36 }
 0x336   : > { %662 = shalt.err (!%p659_p4)
}
 0x337   : > { %s663_s13 = scalar_lea.hbm %s889_s15, 128  ;;  %s667_s26 = scalar_lea.hbm %s938_s5, 256 }
 0x338   : > { %p664_p5 = scmp.ne.s32.totalorder %s889_s15, %s663_s13  ;;  %p668_p0 = scmp.lt.u32.totalorder %s889_s15, %s938_s5 }
 0x339   : > { %p669_p1 = scmp.lt.u32.totalorder %s667_s26, %s663_s13  ;;  %p671_p6 = scmp.lt.u32.totalorder %s663_s13, %s889_s15 }
 0x33a   : > { %p665_p8 = pnand %p664_p5, %p947_p11 }
 0x33b   : > { %p670_p3 = por %p669_p1, %p668_p0 }
 0x33c   : > { %p666_p9 = pneg %p665_p8 }
 0x33d   : > { %p672_p12 = por %p671_p6, %p670_p3 }
 0x33f   : > { %p673_p13 = pnand %p672_p12, %p666_p9 }
 0x341   : > { %676 = shalt.err (!%p673_p13)
}
 0x342   : > { %561 = dma.vmem_to_hbm [thread:$0]  (%p947_p11), %s891_s10, 128, %s889_s15, %s439_s12  }
 0x343 PF: > { %s465_s7 = sand.u32 1, %s703_s18   ;;  %p948_p7 = scmp.ne.s32.totalorder %s943_s6, 0 }
 0x344   : > { %p949_p10 = scmp.ge.s32.totalorder %s715_s21, 2  ;;  %s466_s9 = scalar_lea.sflag [#allocation4], %s465_s7 }
 0x346   : > { %p568_p2 = pnand %p949_p10, %p948_p7 }
 0x348   : > { %698 = dma.done.wait (!%p568_p2), %s466_s9, 128  }
 0x349   : > { %700 = vsyncadd (!%p568_p2), %s466_s9, 4294967168  ;;  %p18_p4 = scmp.ge.s32.totalorder %s778_s24, 4   ;;  %s950_s18 = smov %s707_s19 }
 0x34a   : > { %s951_s19 = smov %s711_s20  ;;  %s952_s20 = smov %s790_s27 }
 0x34b   : > { %s953_s21 = smov %s778_s24  ;;  %20 = sbr.rel (!%p18_p4) target bundleno = 5 (0x5), region = 85 }
 0x352   :  { %471 = vsyncpa [#allocation3], 1 }
 0x353   :  { %473 = vsyncpa [#allocation3 + $0x1], 1 }
 0x354   :  { %474 = vsyncpa [#allocation4], 1 }
 0x355   :  { %476 = vsyncpa [#allocation4 + $0x1], 1 }

</bundles_post_ra>
